<compile_context>
chip_gen: v6e
topology: v6e:2x2x1
jax: 0.10.0
libtpu: 0.0.40
codegen_flags: <defaults>
</compile_context>

<pallas_src>
import functools

import numpy as np
import jax
import jax.numpy as jnp
from jax.experimental import pallas as pl
from jax.experimental.pallas import tpu as pltpu

_NIBBLE_MASK = 0x000F000F
_BF16_MAGIC = 0x43004300      # bf16 "128.0" in both 16-bit halves
_MAGIC_OFFSET = 136.0         # 128 (magic bias) + 8 (symmetric zero point)


# ---------------------------------------------------------------------------
# On-device calibration of pltpu.bitcast(int32 -> bfloat16) row order
# ---------------------------------------------------------------------------
_BITCAST_MAPS = {}


def _bitcast_row_map(nrows):
    """For an (nrows, L) int32 operand, pltpu.bitcast(..., bf16) yields (2*nrows, L).
    Returns a (2*nrows, 2) array mapping each output row u to the (input row r,
    16-bit half h) it reinterprets.  Calibrated on the device itself, so the host
    packer never has to assume a particular sublane packing order."""
    if nrows in _BITCAST_MAPS:
        return _BITCAST_MAPS[nrows]

    def kern(x_ref, o_ref):
        o_ref[...] = pltpu.bitcast(x_ref[...], jnp.bfloat16)

    def bf16_bits(v):
        # bf16 bit pattern of a small exactly-representable float.
        return int(np.array(v, np.float32).view(np.uint32)) >> 16

    words = np.array(
        [(bf16_bits(2 * r + 1) << 16) | bf16_bits(2 * r) for r in range(nrows)],
        dtype=np.int64).astype(np.int32)
    x = jnp.asarray(np.broadcast_to(words[:, None], (nrows, 128)))
    out = pl.pallas_call(
        kern,
        out_shape=jax.ShapeDtypeStruct((2 * nrows, 128), jnp.bfloat16),
    )(x)
    vals = np.asarray(out.astype(jnp.float32))[:, 0].astype(np.int32)
    if sorted(vals.tolist()) != list(range(2 * nrows)):
        raise RuntimeError(f"unexpected pltpu.bitcast row order: {vals}")
    rh = np.stack([vals // 2, vals % 2], axis=1)
    _BITCAST_MAPS[nrows] = rh
    return rh


def _device_kind():
    try:
        return jax.devices()[0].device_kind.lower()
    except Exception:
        return ""


def _prefers_fused_dot():
    # v2-v5 have 128-deep MXUs and no native bf16 VPU path: keep per-group dots
    # with the offset folded into the accumulator there.  v6e/v7x (and unknown,
    # newer chips) get the single K = bk dot with bf16 row-scaled weights.
    kind = _device_kind()
    return not any(t in kind for t in ("v2", "v3", "v4", "v5"))


# ---------------------------------------------------------------------------
# Pallas kernel
# ---------------------------------------------------------------------------
def _unpack_group_magic(qg):
    """(gq, tn) int32 packed nibbles -> (8*gq, tn) bf16 values equal to (128 + code)."""
    parts = []
    for a in range(4):
        t = qg if a == 0 else (qg >> (4 * a))
        t = (t & _NIBBLE_MASK) | _BF16_MAGIC
        parts.append(pltpu.bitcast(t, jnp.bfloat16))
    return jnp.concatenate(parts, axis=0)


def _marlin_kernel(a_ref, bq_ref, s_ref, o_ref, acc_ref, *,
                   bk, gpb, gsz, groupsize, fused_dot):
    kk = pl.program_id(2)

    @pl.when(kk == 0)
    def _():
        acc_ref[...] = jnp.zeros_like(acc_ref)

    gq = gsz // 8
    a = a_ref[...]                                    # (tm, bk) bf16
    q = bq_ref[...]                                   # (bk // 8, tn) int32

    # Scale rows for this k-block, read from the resident (k/groupsize, tn) slab.
    s_base = (kk * bk) // groupsize
    s_blk = s_ref[pl.ds(s_base, gpb), :]              # (gpb, tn) f32

    if fused_dot:
        # Prefill: dequantize + scale the weight rows in bf16; single K = bk dot
        # keeps the 256-deep MXUs of v6e/v7x fully utilized.
        w = jnp.concatenate(
            [(_unpack_group_magic(q[g * gq:(g + 1) * gq, :]) - _MAGIC_OFFSET)
             * s_blk[g:g + 1, :].astype(jnp.bfloat16)
             for g in range(gpb)],
            axis=0)                                   # (bk, tn) bf16
        acc_ref[...] += jnp.dot(a, w, preferred_element_type=jnp.float32)
    else:
        # Decode: fold the 136 offset into a rowsum correction so the weight path
        # needs no per-element subtract; scale only the (tm, tn) accumulator.
        acc = acc_ref[...]
        for g in range(gpb):
            a_g = a[:, g * gsz:(g + 1) * gsz]                       # (tm, gsz)
            w_g = _unpack_group_magic(q[g * gq:(g + 1) * gq, :])    # (gsz, tn)
            pm = jnp.dot(a_g, w_g, preferred_element_type=jnp.float32)
            rs = jnp.sum(a_g.astype(jnp.float32), axis=1, keepdims=True)  # (tm, 1)
            acc = acc + (pm - _MAGIC_OFFSET * rs) * s_blk[g:g + 1, :]
        acc_ref[...] = acc

    @pl.when(kk == pl.num_programs(2) - 1)
    def _():
        o_ref[...] = acc_ref[...].astype(o_ref.dtype)


# ---------------------------------------------------------------------------
# Tile-size selection
# ---------------------------------------------------------------------------
def _pick_bk(k, groupsize):
    """Largest k-block in {512, 256, 128} dividing k, compatible with groupsize."""
    for c in (512, 256, 128):
        if k % c == 0 and (c % groupsize == 0 or groupsize % c == 0):
            return c
    return 128


def _pick_tn(n):
    """Largest n-block that still leaves >= 2 n-blocks (keeps both v7x TCs busy)."""
    for c in (2048, 1024, 512, 256, 128):
        if n % c == 0 and n // c >= 2:
            return c
    return n


def _pick_tm(m):
    if m <= 256:
        return m                     # whole batch for decode-sized m
    for c in (512, 256):             # prefill row blocks; wrapper pads m if needed
        if m % c == 0:
            return c
    return 256


# ---------------------------------------------------------------------------
# pallas_call wrapper
# ---------------------------------------------------------------------------
def marlin_matmul(a, bq, s_slab, groupsize, bk, *, tn=None, tm=None, force_fused=None):
    """a: (m, k) bf16; bq: (k//8, n) int32 packed codes (layout from pack_codes);
    s_slab: (ceil8(k//groupsize), n) f32 per-group scales (zero-padded rows)."""
    m, k = a.shape
    n = bq.shape[1]
    gpb = max(bk // groupsize, 1)          # quantization groups per k-block
    gsz = min(groupsize, bk)               # rows of one group inside a k-block
    tn = _pick_tn(n) if tn is None else tn
    tm = _pick_tm(m) if tm is None else tm

    # Pad m so every row block is a full, fast-path tile (no masked partial stores,
    # no giant tm == m accumulator for awkward m).
    m_pad = pl.cdiv(m, tm) * tm
    if m_pad != m:
        a = jnp.pad(a, ((0, m_pad - m), (0, 0)))

    if force_fused is not None:
        fused_dot = force_fused
    else:
        fused_dot = tm >= 128 and _prefers_fused_dot()

    grid = (m_pad // tm, n // tn, k // bk)
    kernel = functools.partial(_marlin_kernel, bk=bk, gpb=gpb, gsz=gsz,
                               groupsize=groupsize, fused_dot=fused_dot)

    def run(deep_bq_buffering):
        bq_kwargs = {}
        if deep_bq_buffering:
            # Decode on newer chips: 3-deep bq buffering hides DMA issue latency.
            bq_kwargs["pipeline_mode"] = pl.Buffered(3)
        gs = pltpu.PrefetchScalarGridSpec(
            num_scalar_prefetch=0,
            grid=grid,
            in_specs=[
                pl.BlockSpec((tm, bk), lambda i, j, kk: (i, kk)),
                pl.BlockSpec((bk // 8, tn), lambda i, j, kk: (kk, j), **bq_kwargs),
                # Resident scale slab: fetched once per output tile, indexed
                # dynamically by k-block inside the kernel.
                pl.BlockSpec((s_slab.shape[0], tn), lambda i, j, kk: (0, j)),
            ],
            out_specs=pl.BlockSpec((tm, tn), lambda i, j, kk: (i, j)),
            scratch_shapes=[pltpu.VMEM((tm, tn), jnp.float32)],
        )
        return pl.pallas_call(
            kernel,
            out_shape=jax.ShapeDtypeStruct((m_pad, n), a.dtype),
            grid_spec=gs,
            compiler_params=pltpu.CompilerParams(
                dimension_semantics=("parallel", "parallel", "arbitrary"),
                # Largest tiles used here (tm=512, tn=2048, bk=512) have a
                # steady-state footprint of ~14 MiB (4 MiB f32 acc, 2x2 MiB bf16
                # out, 2x1 MiB A/bq buffers, ~2 MiB dequant intermediates,
                # <=0.5 MiB scales); 32 MiB leaves headroom even on v7x's
                # 64 MiB physical VMEM.
                vmem_limit_bytes=32 * 1024 * 1024,
            ),
        )(a, bq, s_slab)

    want_deep_bq = ((not fused_dot) and tm < 128 and _prefers_fused_dot()
                    and hasattr(pl, "Buffered"))
    if want_deep_bq:
        try:
            out = run(True)
        except Exception:           # older jax without BlockSpec pipeline_mode
            out = run(False)
    else:
        out = run(False)
    return out[:m] if m_pad != m else out


# ---------------------------------------------------------------------------
# Host-side packing (TPU-friendly layout; dequant math identical to Marlin)
# ---------------------------------------------------------------------------
def pack_codes(codes, bk, gsz, rh_of_u):
    """codes: (k, n) ints in [0, 15] -> (k//8, n) int32, 8 codes per word.

    The layout is chosen so the in-kernel magic-number unpack (4 shift/mask/or
    passes, each pltpu.bitcast to bf16, concatenated along sublanes) recovers the
    codes in k order within each quantization group.  `rh_of_u` is the on-device
    calibrated bitcast row map (see _bitcast_row_map)."""
    codes = np.asarray(codes, dtype=np.uint32)
    K, N = codes.shape
    gq = gsz // 8                            # packed int32 rows per group
    gpb = bk // gsz                          # groups per k-block
    c = codes.reshape(K // bk, gpb, gsz, N)
    q = np.zeros((K // bk, gpb, gq, N), dtype=np.uint32)
    for j in range(gsz):                     # group-local k index
        a, u = divmod(j, 2 * gq)             # shift pass / bf16 output row
        r, h = int(rh_of_u[u, 0]), int(rh_of_u[u, 1])   # packed row / 16-bit half
        nib = a + 4 * h                      # nibble position inside the int32 word
        q[:, :, r, :] |= c[:, :, j, :] << np.uint32(4 * nib)
    return jnp.asarray(q.reshape(K // 8, N).view(np.int32))


def pack_scales(s):
    """(k//groupsize, n) bf16 scales -> sublane-padded f32 slab for the kernel."""
    s32 = jnp.asarray(s, jnp.float32)
    rows = s32.shape[0]
    rows_pad = max(8, -(-rows // 8) * 8)
    if rows_pad != rows:
        s32 = jnp.concatenate(
            [s32, jnp.zeros((rows_pad - rows, s32.shape[1]), jnp.float32)], axis=0)
    return s32


class MarlinLayer:
    """JAX/Pallas equivalent of the PyTorch Marlin `Layer_2_4`
    (4-bit symmetric grouped linear, no bias).

    TODO(synk): the CUDA `workspace` buffer, the 2:4 sparsity `meta` path, and the
    column-major I/O layouts have no TPU analogue; this is the dense 4-bit
    dequant matmul only."""

    def __init__(self, infeatures, outfeatures, groupsize=-1, *, key=None):
        if groupsize not in [-1, 128]:
            raise ValueError("Only groupsize -1 and 128 are supported.")
        if infeatures % 128 != 0 or outfeatures % 256 != 0:
            raise ValueError("`infeatures` must be divisible by 128 and `outfeatures` by 256.")
        if groupsize == -1:
            groupsize = infeatures
        if infeatures % groupsize != 0:
            raise ValueError("`infeatures` must be divisible by `groupsize`.")
        self.k = infeatures
        self.n = outfeatures
        self.groupsize = groupsize
        self.bk = _pick_bk(infeatures, groupsize)
        self.gsz = min(groupsize, self.bk)

        # Deterministic synthetic quantized weights + scales (stand-in for `pack()`).
        key = jax.random.PRNGKey(42) if key is None else key
        kc, ks = jax.random.split(key)
        self.codes = jax.random.randint(kc, (self.k, self.n), 0, 16, dtype=jnp.int32)
        self.s = jax.random.uniform(ks, (self.k // groupsize, self.n),
                                    minval=0.01, maxval=0.1,
                                    dtype=jnp.float32).astype(jnp.bfloat16)

        rh_of_u = _bitcast_row_map(self.gsz // 8)
        self.B = pack_codes(np.asarray(self.codes), self.bk, self.gsz, rh_of_u)
        self.s_slab = pack_scales(self.s)

    def __call__(self, A):
        A2d = A.reshape((-1, A.shape[-1]))
        C2d = marlin_matmul(A2d, self.B, self.s_slab, self.groupsize, self.bk)
        return C2d.reshape(A.shape[:-1] + (self.n,))

    def dequant_reference(self):
        """Pure-JAX reference of the dequantized weight (k, n), float32."""
        scale_full = jnp.repeat(self.s.astype(jnp.float32), self.groupsize, axis=0)
        return (self.codes.astype(jnp.float32) - 8.0) * scale_full


if __name__ == "__main__":
    configs = [
        # (infeatures, outfeatures, groupsize, leading A shape)
        (1024, 512, 128, (2, 4)),    # decode path: bk=512, 4 groups/blk, 2 k-steps
        (256, 256, -1, (2, 4)),      # decode path, single group spans all of k
        (512, 256, 128, (2, 64)),    # m=128 -> prefill-sized row tile
    ]
    key = jax.random.PRNGKey(0)
    for infeatures, outfeatures, groupsize, lead in configs:
        layer = MarlinLayer(infeatures, outfeatures, groupsize,
                            key=jax.random.PRNGKey(1))
        A = jax.random.normal(key, lead + (infeatures,), dtype=jnp.bfloat16)

        C = jax.block_until_ready(layer(A))
        assert C.shape == lead + (outfeatures,)
        assert C.dtype == A.dtype

        # Pure-JAX reference check (float32 math).
        W_ref = layer.dequant_reference()                                  # (k, n)
        C_ref = A.reshape(-1, infeatures).astype(jnp.float32) @ W_ref
        C_ref = C_ref.reshape(lead + (outfeatures,))
        np.testing.assert_allclose(np.asarray(C, dtype=np.float32),
                                   np.asarray(C_ref), rtol=3e-2, atol=1e-1)

        # Also exercise the fused (single K = bk dot) prefill branch explicitly,
        # independent of the chip-generation heuristic.
        if lead == (2, 64):
            C2 = marlin_matmul(A.reshape(-1, infeatures), layer.B, layer.s_slab,
                               layer.groupsize, layer.bk, force_fused=True)
            C2 = jax.block_until_ready(C2)
            np.testing.assert_allclose(
                np.asarray(C2, dtype=np.float32),
                np.asarray(C_ref.reshape(-1, outfeatures)), rtol=3e-2, atol=1e-1)

    print("KERNEL_OK")
</pallas_src>

<mosaic_0001>
module attributes {stable_mosaic.version = 11 : i64} {
  func.func @kern(%arg0: memref<16x128xi32, #tpu.memory_space<vmem>>, %arg1: memref<32x128xbf16, #tpu.memory_space<vmem>>) attributes {dimension_semantics = [], scalar_prefetch = 0 : i64, scratch_operands = 0 : i64, tpu.core_type = #tpu.core_type<tc>} {
    %c0 = arith.constant 0 : index
    %c0_0 = arith.constant 0 : index
    %0 = vector.load %arg0[%c0, %c0_0] : memref<16x128xi32, #tpu.memory_space<vmem>>, vector<16x128xi32>
    %1 = tpu.bitcast %0 : vector<16x128xi32> -> vector<32x128xbf16>
    %c0_1 = arith.constant 0 : index
    %c0_2 = arith.constant 0 : index
    %2 = vector.load %arg1[%c0_1, %c0_2] : memref<32x128xbf16, #tpu.memory_space<vmem>>, vector<32x128xbf16>
    tpu.vector_store %arg1[%c0_1, %c0_2], %1 {strides = array<i32>} : memref<32x128xbf16, #tpu.memory_space<vmem>>, vector<32x128xbf16>,
    return
  }
}

</mosaic_0001>

<bundles_post_ra>
// kernel: tpu_custom_call.1
= control target key start
LH: loop header
LB: loop body
LE: loop exit
PB: predicated region body
PF: predicated region fallthrough
CT: control target
= control target key end

     0   :  { %6 = vsyncpa [#allocation3], 0  ;;  %s140_s0 = inlined_call_operand.hbm [shape: s32[16,128], index: 0, kind: input, shape index: {}]   ;;  %s141_s1 = inlined_call_operand.hbm [shape: bf16[32,128], index: 1, kind: output, shape index: {}]  }
   0x1   :  { %7 = vsyncpa [#allocation4], 0  ;;  %s118_s6 = smov [#allocation2]  }
   0x2   :  { %s13_s7 = sshll.u32 %s118_s6, 4  ;;  %s14_s7 = int_to_ptr.vmem [resolvable:$true] %s13_s7 }
   0x3   :  { %s82_s8 = scalar_lea.vmem %s14_s7, 256  ;;  %p87_p1 = scmp.lt.s32.totalorder %s14_s7, %s14_s7 }
   0x4   :  { %p83_p0 = scmp.ne.s32.totalorder %s14_s7, %s82_s8  ;;  %p88_p2 = scmp.lt.s32.totalorder %s82_s8, %s82_s8 }
   0x6   :  { %p89_p3 = por %p88_p2, %p87_p1 }
   0x8   :  { %p90_p4 = pnand %p89_p3, %p83_p0 }
   0xa   :  { %93 = shalt.err (!%p90_p4)
}
   0xb   :  { %s119_s9 = smov 128   ;;  %s120_s10 = smov 8  }
   0xc   :  { %19 = dma.hbm_to_vmem [thread:$0]  %s140_s0, 256, %s14_s7, [#allocation3], %s119_s9, %s119_s9, %s120_s10  }
   0xd   :  { %114 = dma.done.wait [#allocation3], 256  }
   0xe   :  { %115 = vsyncadd [#allocation3], 4294967040  ;;  %s121_s13 = smov [#allocation5]   ;;  %v23_v0 = vld [vmem:[#allocation2] sm:$0xff]  ;;  %v24_v1 = vld [vmem:[#allocation2 + $0x8] sm:$0xff] }
   0xf   :  { %s48_s14 = sshll.u32 %s121_s13, 4  ;;  %v60_v2 = vcombine.low %v23_v0, %v23_v0  ;;  %v61_v3 = vcombine.high %v23_v0, %v23_v0  ;;  %v62_v4 = vcombine.low %v24_v1, %v24_v1  ;;  %v63_v5 = vcombine.high %v24_v1, %v24_v1  ;;  %s49_s14 = int_to_ptr.vmem [resolvable:$true] %s48_s14 }
  0x10   :  { %s94_s15 = scalar_lea.vmem %s49_s14, 256  ;;  %p99_p6 = scmp.lt.s32.totalorder %s49_s14, %s49_s14 }
  0x11   :  { %39 = vst [vmem:[#allocation5] sm:$0xf] %v60_v2  ;;  %40 = vst [vmem:[#allocation5 + $0x4] sm:$0xf] %v61_v3  ;;  %p95_p5 = scmp.ne.s32.totalorder %s49_s14, %s94_s15  ;;  %p100_p7 = scmp.lt.s32.totalorder %s94_s15, %s94_s15 }
  0x12   :  { %41 = vst [vmem:[#allocation5 + $0x8] sm:$0xf] %v62_v4  ;;  %42 = vst [vmem:[#allocation5 + $0xc] sm:$0xf] %v63_v5 }
  0x13   :  { %p101_p8 = por %p100_p7, %p99_p6 }
  0x15   :  { %p102_p9 = pnand %p101_p8, %p95_p5 }
  0x17   :  { %105 = shalt.err (!%p102_p9)
}
  0x18   :  { %s122_s0 = smov 64   ;;  %s123_s16 = smov 4  }
  0x19   :  { %54 = dma.vmem_to_hbm [thread:$0]  %s49_s14, 256, %s141_s1, [#allocation4], %s122_s0, %s122_s0, %s123_s16  }
  0x1a   :  { %116 = dma.done.wait [#allocation4], 256  }
  0x1b   :  { %117 = vsyncadd [#allocation4], 4294967040 }
  0x1c   :  { %58 = vsyncpa [#allocation3], 1 }
  0x1d   :  { %59 = vsyncpa [#allocation4], 1 }

</bundles_post_ra>
